<compile_context>
chip_gen: v5e
topology: v5e:2x2
jax: 0.10.0
libtpu: 0.0.40
codegen_flags: <defaults>
</compile_context>

<pallas_src>
import functools

import jax
import jax.numpy as jnp
from jax import lax
from jax.experimental import pallas as pl
from jax.experimental.pallas import tpu as pltpu

EPS = 1e-5
K = 5        # depthwise kernel size
PAD = 2      # "same" padding for 5x5, stride 1
LANES = 128


# ----------------------------------------------------------------------------
# Tiny one-off probe: detect pltpu.roll's rotation convention so the depthwise
# tap shifts are built with the right sign regardless of backend convention.
# ----------------------------------------------------------------------------
def _roll_probe_kernel(x_ref, o_ref):
    o_ref[...] = pltpu.roll(x_ref[...], 1, axis=1)


@functools.lru_cache(maxsize=1)
def _roll_matches_jnp():
    x = jnp.broadcast_to(jnp.arange(LANES, dtype=jnp.float32)[None, :], (8, LANES))
    y = pl.pallas_call(
        _roll_probe_kernel,
        out_shape=jax.ShapeDtypeStruct((8, LANES), jnp.float32),
    )(x)
    # jnp.roll convention puts lane 127 at lane 0 after a shift of +1.
    return bool(float(y[0, 0]) > 64.0)


# ----------------------------------------------------------------------------
# Kernel
# ----------------------------------------------------------------------------
def _make_spp_kernel(WP, PL, roll_is_jnp):
    def shift_for(delta):
        # We want tap[p] = buf[p + delta] (no wrap for interior positions).
        return ((-delta) % PL) if roll_is_jnp else (delta % PL)

    def kernel(x_ref, mask_ref, w1t_ref, wot_ref, dww_ref, bias_ref, o_ref):
        mask = mask_ref[...]                                   # (1, PL), 1.0 on interior

        # ---- 1x1 conv + BN + ReLU (MXU, bf16 in / f32 acc; scale folded) ----
        z = jnp.dot(w1t_ref[...], x_ref[0],
                    preferred_element_type=jnp.float32)        # (C, PL) f32
        z = jnp.maximum(z + bias_ref[0], 0.0) * mask           # zero 2-px halo

        # ---- depthwise 5x5 + BN + ReLU: 25 lane-rolled taps ----
        def dwconv_bn_relu(buf, i):
            base = i * K * K
            acc = buf * dww_ref[base + PAD * K + PAD]          # centre tap (delta == 0)
            for t in range(K * K):
                dy, dx = t // K, t % K
                delta = (dy - PAD) * WP + (dx - PAD)
                if delta == 0:
                    continue
                tap = pltpu.roll(buf, shift_for(delta), axis=1)    # XLU lane shift
                acc = acc + tap * dww_ref[base + t]                # VPU MAC
            # re-zero the halo so the next stage sees proper zero padding
            return jnp.maximum(acc + bias_ref[1 + i], 0.0) * mask

        y1 = dwconv_bn_relu(z, 0)                                        # S1
        y2 = dwconv_bn_relu(dwconv_bn_relu(z, 1), 2)                     # S2
        y3 = dwconv_bn_relu(dwconv_bn_relu(dwconv_bn_relu(z, 3), 4), 5)  # S3

        # ---- fuse 1x1 conv as three CxC matmuls (no 3C concat copy) ----
        yo = jnp.dot(wot_ref[0], y1.astype(jnp.bfloat16),
                     preferred_element_type=jnp.float32)
        yo = yo + jnp.dot(wot_ref[1], y2.astype(jnp.bfloat16),
                          preferred_element_type=jnp.float32)
        yo = yo + jnp.dot(wot_ref[2], y3.astype(jnp.bfloat16),
                          preferred_element_type=jnp.float32)

        # residual + BN bias + ReLU (halo / tail lanes are cropped by the wrapper)
        o_ref[0] = jnp.maximum(z + yo + bias_ref[7], 0.0)

    return kernel


# ----------------------------------------------------------------------------
# Wrapper: host-side BN folding, layout prep, pallas_call, halo crop
# ----------------------------------------------------------------------------
def spp_pallas(x_nchw, w1, bn1s, bn1b, dww, dws, dwb, wo, bos, bob):
    N, Cin, H, W = x_nchw.shape
    C = w1.shape[1]
    HP, WP = H + 2 * PAD, W + 2 * PAD
    P = HP * WP
    PL = ((P + LANES - 1) // LANES) * LANES     # lane-dense length (multiple of 128)

    # Fold BN scales into the conv weights (computed once, outside the kernel).
    w1t = jnp.transpose(w1 * bn1s[None, :]).astype(jnp.bfloat16)            # (C, Cin)
    wo_s = wo * bos[None, :]                                                # (3C, C)
    wot = jnp.stack([jnp.transpose(wo_s[j * C:(j + 1) * C, :])
                     for j in range(3)]).astype(jnp.bfloat16)               # (3, C, C)
    dww_s = (dww * dws[:, None, None, :]).reshape(6 * K * K, C)[..., None]  # (150, C, 1)
    biases = jnp.stack([bn1b] + [dwb[i] for i in range(6)] + [bob],
                       axis=0)[..., None]                                   # (8, C, 1)

    # Zero-padded, flattened (lane-dense) activations + interior mask.
    xp = jnp.pad(x_nchw, ((0, 0), (0, 0), (PAD, PAD), (PAD, PAD)))
    xp = xp.reshape(N, Cin, P)
    xp = jnp.pad(xp, ((0, 0), (0, 0), (0, PL - P))).astype(jnp.bfloat16)    # (N, Cin, PL)
    m = jnp.zeros((HP, WP), jnp.float32).at[PAD:PAD + H, PAD:PAD + W].set(1.0)
    mask = jnp.pad(m.reshape(1, P), ((0, 0), (0, PL - P)))                  # (1, PL)

    kernel = _make_spp_kernel(WP, PL, _roll_matches_jnp())

    # TODO(synk): for large H*W*C add a row-tile grid axis with a 6-row halo
    # (three chained 5x5 convs) and re-budget the tile for v7x's 64 MiB VMEM.
    out_pad = pl.pallas_call(
        kernel,
        out_shape=jax.ShapeDtypeStruct((N, C, PL), jnp.float32),
        grid=(N,),
        in_specs=[
            pl.BlockSpec((1, Cin, PL), lambda b: (b, 0, 0)),        # activations
            # constant block index => fetched once and reused across the grid
            pl.BlockSpec((1, PL), lambda b: (0, 0)),                # interior mask
            pl.BlockSpec((C, Cin), lambda b: (0, 0)),               # 1x1 in-conv (bf16)
            pl.BlockSpec((3, C, C), lambda b: (0, 0, 0)),           # fuse conv (bf16)
            pl.BlockSpec((6 * K * K, C, 1), lambda b: (0, 0, 0)),   # dw taps (scaled)
            pl.BlockSpec((8, C, 1), lambda b: (0, 0, 0)),           # folded BN biases
        ],
        out_specs=pl.BlockSpec((1, C, PL), lambda b: (b, 0, 0)),
        compiler_params=pltpu.CompilerParams(
            dimension_semantics=("parallel",),       # batch across v7x's 2 cores
            vmem_limit_bytes=32 * 1024 * 1024,
        ),
    )(xp, mask, w1t, wot, dww_s, biases)

    # Crop the 2-px halo / lane tail and restore NCHW (cheap XLA-side ops).
    out = out_pad[:, :, :P].reshape(N, C, HP, WP)
    return out[:, :, PAD:PAD + H, PAD:PAD + W]


# ----------------------------------------------------------------------------
# Pure-JAX reference (eval-mode BN folded, matmuls in bf16 like the kernel)
# ----------------------------------------------------------------------------
def spp_ref(x_nchw, w1, bn1s, bn1b, dww, dws, dwb, wo, bos, bob):
    C = w1.shape[1]
    x = jnp.transpose(x_nchw, (0, 2, 3, 1))                     # NHWC
    w1f = (w1 * bn1s[None, :]).astype(jnp.bfloat16)
    z = jnp.einsum('nhwi,io->nhwo', x.astype(jnp.bfloat16), w1f,
                   preferred_element_type=jnp.float32)
    z = jnp.maximum(z + bn1b, 0.0)

    def dw(inp, i):
        wk = (dww[i] * dws[i][None, None, :]).reshape(K, K, 1, C)
        y = lax.conv_general_dilated(
            inp, wk, (1, 1), ((PAD, PAD), (PAD, PAD)),
            dimension_numbers=('NHWC', 'HWIO', 'NHWC'),
            feature_group_count=C,
            precision=lax.Precision.HIGHEST)
        return jnp.maximum(y + dwb[i], 0.0)

    y1 = dw(z, 0)
    y2 = dw(dw(z, 1), 2)
    y3 = dw(dw(dw(z, 3), 4), 5)
    wof = (wo * bos[None, :]).astype(jnp.bfloat16)
    ycat = jnp.concatenate([y1, y2, y3], axis=-1).astype(jnp.bfloat16)
    yo = jnp.einsum('nhwi,io->nhwo', ycat, wof,
                    preferred_element_type=jnp.float32)
    out = jnp.maximum(z + yo + bob, 0.0)
    return jnp.transpose(out, (0, 3, 1, 2))                     # NCHW


if __name__ == "__main__":
    key = jax.random.PRNGKey(0)
    N, Cin, H, W = 2, 4, 16, 16     # NCHW input shape
    C = 8                           # output_channels
    keys = jax.random.split(key, 16)

    x_nchw = jax.random.normal(keys[0], (N, Cin, H, W), jnp.float32)

    # Conv weights (no bias, as in the PyTorch module)
    w1 = 0.3 * jax.random.normal(keys[1], (Cin, C), jnp.float32)       # 1x1 in-conv
    dww = 0.1 * jax.random.normal(keys[2], (6, K, K, C), jnp.float32)  # 6 depthwise 5x5
    wo = 0.2 * jax.random.normal(keys[3], (3 * C, C), jnp.float32)     # 1x1 fuse conv

    # Folded eval-mode BatchNorm parameters (deterministic, non-trivial)
    def bn_fold(kg, kb, km, kv, shape):
        gamma = 1.0 + 0.1 * jax.random.normal(kg, shape, jnp.float32)
        beta = 0.1 * jax.random.normal(kb, shape, jnp.float32)
        mean = 0.1 * jax.random.normal(km, shape, jnp.float32)
        var = jnp.abs(jax.random.normal(kv, shape, jnp.float32)) + 0.5
        scale = gamma / jnp.sqrt(var + EPS)
        bias = beta - mean * scale
        return scale, bias

    bn1s, bn1b = bn_fold(keys[4], keys[5], keys[6], keys[7], (C,))
    dws, dwb = bn_fold(keys[8], keys[9], keys[10], keys[11], (6, C))
    bos, bob = bn_fold(keys[12], keys[13], keys[14], keys[15], (C,))

    out = spp_pallas(x_nchw, w1, bn1s, bn1b, dww, dws, dwb, wo, bos, bob)
    out = jax.block_until_ready(out)

    ref = spp_ref(x_nchw, w1, bn1s, bn1b, dww, dws, dwb, wo, bos, bob)
    assert out.shape == (N, C, H, W)
    max_diff = float(jnp.max(jnp.abs(out - ref)))
    assert jnp.allclose(out, ref, rtol=5e-3, atol=5e-3), f"max abs diff {max_diff}"

    print("KERNEL_OK")
</pallas_src>

<mosaic_0001>
module attributes {stable_mosaic.version = 11 : i64} {
  func.func @_roll_probe_kernel(%arg0: memref<8x128xf32, #tpu.memory_space<vmem>>, %arg1: memref<8x128xf32, #tpu.memory_space<vmem>>) attributes {dimension_semantics = [], scalar_prefetch = 0 : i64, scratch_operands = 0 : i64, tpu.core_type = #tpu.core_type<tc>} {
    %c0 = arith.constant 0 : index
    %c0_0 = arith.constant 0 : index
    %0 = vector.load %arg0[%c0, %c0_0] : memref<8x128xf32, #tpu.memory_space<vmem>>, vector<8x128xf32>
    %c1_i32 = arith.constant 1 : i32
    %1 = tpu.dynamic_rotate %0 by %c1_i32 dim 1 : vector<8x128xf32>, i32 -> vector<8x128xf32>
    %c0_1 = arith.constant 0 : index
    %c0_2 = arith.constant 0 : index
    %2 = vector.load %arg1[%c0_1, %c0_2] : memref<8x128xf32, #tpu.memory_space<vmem>>, vector<8x128xf32>
    tpu.vector_store %arg1[%c0_1, %c0_2], %1 {strides = array<i32>} : memref<8x128xf32, #tpu.memory_space<vmem>>, vector<8x128xf32>,
    return
  }
}

</mosaic_0001>

<bundles_post_ra>
// kernel: tpu_custom_call.1
= control target key start
LH: loop header
LB: loop body
LE: loop exit
PB: predicated region body
PF: predicated region fallthrough
CT: control target
= control target key end

     0   :  { %6 = vsyncpa [#allocation3], 0  ;;  %s118_s0 = inlined_call_operand.hbm [shape: f32[8,128], index: 0, kind: input, shape index: {}]   ;;  %s119_s1 = inlined_call_operand.hbm [shape: f32[8,128], index: 1, kind: output, shape index: {}]  }
   0x1   :  { %7 = vsyncpa [#allocation4], 0  ;;  %s13_s8 = sshll.u32 %s118_s0, 4  ;;  %s99_s9 = smov [#allocation2]   ;;  %s14_s8 = int_to_ptr.hbm [resolvable:$true] %s13_s8 }
   0x2   :  { %s15_s10 = sshll.u32 %s99_s9, 4  ;;  %s16_s10 = int_to_ptr.vmem [resolvable:$true] %s15_s10 }
   0x3   :  { %18 = dma.hbm_to_vmem [thread:$0]  %s14_s8, 128, %s16_s10, [#allocation3]  }
   0x4   :  { %95 = dma.done.wait [#allocation3], 128  }
   0x5   :  { %96 = vsyncadd [#allocation3], 4294967168  ;;  %v23_v0 = vld [vmem:[#allocation2] sm:$0xff]  ;;  %s100_s11 = smov 1   ;;  %s101_s12 = smov [#allocation5]  }
   0x6   :  { %24 = vrot.lane.b32.xlu0 %v23_v0, %s100_s11  ;;  %s32_s13 = sshll.u32 %s101_s12, 4  ;;  %s34_s16 = sshll.u32 %s119_s1, 4  ;;  %s33_s13 = int_to_ptr.vmem [resolvable:$true] %s32_s13  ;;  %s35_s16 = int_to_ptr.hbm [resolvable:$true] %s34_s16 }
  0x78   :  { %v25_v1 = vpop.permute.xlu0 %24 }
  0x79   :  { %26 = vst [vmem:[#allocation5] sm:$0xff] %v25_v1 }
  0x7a   :  { %37 = dma.vmem_to_hbm [thread:$0]  %s33_s13, 128, %s35_s16, [#allocation4]  }
  0x7b   :  { %97 = dma.done.wait [#allocation4], 128  }
  0x7c   :  { %98 = vsyncadd [#allocation4], 4294967168 }
  0x7d   :  { %42 = vsyncpa [#allocation3], 1 }
  0x7e   :  { %43 = vsyncpa [#allocation4], 1 }

</bundles_post_ra>
